<compile_context>
chip_gen: v7x
topology: tpu7x:2x2x1
jax: 0.10.0
libtpu: 0.0.40
codegen_flags: <defaults>
</compile_context>

<pallas_src>
import functools

import jax
import jax.numpy as jnp
from jax.experimental import pallas as pl
from jax.experimental.pallas import tpu as pltpu

LANE = 128                    # vreg lane width
ROW_ALIGN = 32                # block rows multiple of 32: f32/bf16/int8 sublane packing stays legal
MIN_SPLIT_BYTES = 1 << 20     # above this, force >=2 blocks so both v7x TCs participate
MIN_PALLAS_ELEMS = 1 << 20    # below this, XLA's fused elementwise beats any custom kernel
VMEM_LIMIT_BYTES = 48 << 20   # explicit scoped VMEM: fits v7x 64 MiB physical, >> v5e 16 MiB default


def tanh_rt_kernel(eta_ref, z_ref, o_ref, *, compute_dtype):
    # eta_ref: SMEM f32[4] = [eta0, eta1, eta2, eta3]
    # Keep the original (z - e2) * e3 form: algebraically equal to the folded
    # z*e3 - e2*e3 but numerically better when z ~ e2 and |e3| is large.
    z = z_ref[...].astype(compute_dtype)
    e0 = eta_ref[0].astype(compute_dtype)
    e1 = eta_ref[1].astype(compute_dtype)
    e2 = eta_ref[2].astype(compute_dtype)
    e3 = eta_ref[3].astype(compute_dtype)
    o_ref[...] = (e0 + e1 * jnp.tanh((z - e2) * e3)).astype(o_ref.dtype)


def _device_kind():
    try:
        return jax.devices()[0].device_kind.lower()
    except Exception:
        return ""


def _target_block_bytes():
    # ~8 MiB tiles on v7x, ~4 MiB elsewhere.  4 VMEM buffers (double-buffered
    # input + output) = 4x tile, which stays within VMEM_LIMIT_BYTES everywhere.
    kind = _device_kind()
    return (8 << 20) if ("v7" in kind or "7x" in kind) else (4 << 20)


def _compute_dtype_for(dtype):
    if dtype == jnp.bfloat16:
        kind = _device_kind()
        # v5e has no bf16 VPU/EUP -> upcast there; v6e/v7x run bf16 natively.
        if "v5 lite" in kind or "v5e" in kind or "v5lite" in kind:
            return jnp.float32
        return jnp.bfloat16
    return jnp.float32


def _pick_width(n):
    """Widest lane-multiple that evenly divides n (n is already a multiple of 128)."""
    for w in (1024, 512, 256, 128):
        if n % w == 0:
            return w
    return LANE


def _choose_blocking(rows, width, itemsize):
    bytes_per_row = width * itemsize
    total_bytes = rows * bytes_per_row
    if total_bytes <= MIN_SPLIT_BYTES:
        # Small enough: one full-extent block (always layout-legal); not worth
        # splitting across v7x's two TensorCores.
        return rows, 1
    max_rows = max(ROW_ALIGN,
                   (_target_block_bytes() // bytes_per_row) // ROW_ALIGN * ROW_ALIGN)
    n_blocks = max(2, pl.cdiv(rows, max_rows))   # keep both v7x TCs busy
    if n_blocks % 2:
        n_blocks += 1                            # even count: no TC idles on the tail step
    block_rows = pl.cdiv(pl.cdiv(rows, n_blocks), ROW_ALIGN) * ROW_ALIGN
    block_rows = min(block_rows, rows)
    grid = pl.cdiv(rows, block_rows)
    return block_rows, grid


def _tanh_rt_pallas(z2d, eta_packed, out_dtype, compute_dtype):
    rows, width = z2d.shape
    itemsize = jnp.dtype(z2d.dtype).itemsize
    block_rows, num_blocks = _choose_blocking(rows, width, itemsize)
    n_elems = rows * width

    # NOTE: the final grid block may be partial; Pallas reads the out-of-bounds
    # rows as padding, computes tanh of that garbage, and masks its writes.
    # This is correct by construction -- do not "optimize" the masking away.
    kernel = functools.partial(tanh_rt_kernel, compute_dtype=compute_dtype)
    return pl.pallas_call(
        kernel,
        out_shape=jax.ShapeDtypeStruct((rows, width), out_dtype),
        grid=(num_blocks,),
        in_specs=[
            pl.BlockSpec(memory_space=pltpu.MemorySpace.SMEM),     # eta scalars
            pl.BlockSpec((block_rows, width), lambda i: (i, 0)),   # z tile
            # TODO(synk): sweep pipeline_mode=pl.Buffered(3) here if xprof shows
            # exposed DMA waits on v7x after the tile enlargement.
        ],
        out_specs=pl.BlockSpec((block_rows, width), lambda i: (i, 0)),
        compiler_params=pltpu.CompilerParams(
            dimension_semantics=("parallel",),       # independent tiles -> both TCs on v7x
            vmem_limit_bytes=VMEM_LIMIT_BYTES),
        cost_estimate=pl.CostEstimate(
            flops=4 * n_elems,
            transcendentals=n_elems,
            bytes_accessed=2 * n_elems * itemsize),
        # TODO(synk): pass input_output_aliases={1: 0} when z is dead after this
        # op (halves peak HBM footprint; does not change traffic).
    )(eta_packed, z2d)


def _tanh_rt_jnp(z, eta):
    return (eta[0] + eta[1] * jnp.tanh((z - eta[2]) * eta[3])).astype(z.dtype)


def tanh_rt_apply(z, eta, *, force_pallas=False):
    """Elementwise eta[0] + eta[1]*tanh((z - eta[2])*eta[3]) via Pallas."""
    orig_shape = z.shape
    dtype = z.dtype
    n = z.size

    if not jnp.issubdtype(dtype, jnp.floating):
        # TODO(synk): integer / exotic activation dtypes are not supported by the
        # kernel path (the final cast would silently truncate); use plain jnp.
        return _tanh_rt_jnp(z, eta)

    # Small-size fast path: a 1-block pallas_call cannot beat XLA's fused
    # elementwise for small activations (launch + DMA setup overhead dominates).
    if n < MIN_PALLAS_ELEMS and not force_pallas:
        return _tanh_rt_jnp(z, eta)

    n_bulk = (n // LANE) * LANE
    if n_bulk == 0:
        return _tanh_rt_jnp(z, eta)

    eta_packed = jnp.stack([eta[0], eta[1], eta[2], eta[3]]).astype(jnp.float32)
    compute_dtype = _compute_dtype_for(dtype)

    flat = z.reshape(-1)
    tail = n - n_bulk

    # Bulk + tail split for ragged sizes (no full-array jnp.pad copy): the kernel
    # handles the largest 128-divisible prefix, the <128-element tail is plain jnp.
    # TODO(synk): a masked tail store inside the kernel would also remove the concat.
    bulk = flat[:n_bulk] if tail else flat

    width = _pick_width(n_bulk)
    z2d = bulk.reshape(-1, width)
    out_flat = _tanh_rt_pallas(z2d, eta_packed, dtype, compute_dtype).reshape(-1)

    if tail:
        tail_out = _tanh_rt_jnp(flat[n_bulk:], eta)
        out_flat = jnp.concatenate([out_flat, tail_out])
    return out_flat.reshape(orig_shape)


def compute_eta(rt_, X_min, X_max, Y_min, Y_max, mlp_params):
    """Replicates TanhRT.RT / RTn_extend / eta properties (trace-time glue)."""
    rt_temp = jax.nn.sigmoid(rt_)                      # sigmoid of learnable rt_
    RTn = jnp.zeros((9,), jnp.float32).at[:6].set(rt_temp)
    RT = RTn * (X_max - X_min) + X_min                 # denormalize
    RT_extend = jnp.stack([RT[0], RT[1], RT[2], RT[3], RT[4], RT[5],
                           RT[1] / RT[0], RT[3] / RT[2], RT[5] / RT[4]])
    RTn_extend = (RT_extend - X_min) / (X_max - X_min)  # renormalize, shape (9,)
    # TODO(synk): the real eta_estimator is loaded from './utils/act_model_package';
    # here a deterministic 9->32->4 MLP (tanh hidden, sigmoid output) stands in.
    W1, b1, W2, b2 = mlp_params
    h = jnp.tanh(RTn_extend @ W1 + b1)
    eta_n = jax.nn.sigmoid(h @ W2 + b2)                # normalized eta in [0,1]
    eta = eta_n * (Y_max - Y_min) + Y_min              # denormalize, shape (4,)
    return eta.astype(jnp.float32)


if __name__ == "__main__":
    key = jax.random.PRNGKey(0)
    k_w1, k_w2, k_x, k_r = jax.random.split(key, 4)

    # Deterministic stand-ins for args.ACT_R1n..ACT_L2n and the checkpointed
    # min/max normalization tensors (X ranges chosen so no divide-by-~0).
    rt_ = jnp.array([0.1, -0.2, 0.3, -0.4, 0.5, -0.6], jnp.float32)     # (6,)
    X_min = jnp.full((9,), 0.5, jnp.float32)
    X_max = jnp.full((9,), 2.0, jnp.float32)
    Y_min = jnp.array([0.0, 0.5, -0.1, 0.5], jnp.float32)               # (4,)
    Y_max = jnp.array([0.2, 1.5, 0.1, 4.0], jnp.float32)                # (4,)

    W1 = jax.random.normal(k_w1, (9, 32), jnp.float32) * 0.3
    b1 = jnp.zeros((32,), jnp.float32)
    W2 = jax.random.normal(k_w2, (32, 4), jnp.float32) * 0.3
    b2 = jnp.zeros((4,), jnp.float32)

    eta = compute_eta(rt_, X_min, X_max, Y_min, Y_max, (W1, b1, W2, b2))

    # Example activation tensors.
    x = jax.random.normal(k_x, (2, 4, 16, 16), jnp.float32)        # NCHW-like, 2048 elems
    x_ragged = jax.random.normal(k_r, (3, 5, 7, 5), jnp.float32)   # 525 elems -> bulk+tail path

    # 1) Pallas kernel path (forced; the auto dispatcher would use the small-size
    #    fast path for shapes this tiny).
    out = jax.block_until_ready(tanh_rt_apply(x, eta, force_pallas=True))
    ref = eta[0] + eta[1] * jnp.tanh((x - eta[2]) * eta[3])
    assert out.shape == x.shape and out.dtype == x.dtype
    assert jnp.allclose(out, ref, atol=1e-5, rtol=1e-5), "f32 kernel/reference mismatch"

    # 2) Auto dispatch (small-size fast path) must agree too.
    out_auto = jax.block_until_ready(tanh_rt_apply(x, eta))
    assert jnp.allclose(out_auto, ref, atol=1e-5, rtol=1e-5), "fast-path mismatch"

    # 3) Ragged element count (bulk kernel + jnp tail, no pad copy).
    out_r = jax.block_until_ready(tanh_rt_apply(x_ragged, eta, force_pallas=True))
    ref_r = eta[0] + eta[1] * jnp.tanh((x_ragged - eta[2]) * eta[3])
    assert out_r.shape == x_ragged.shape
    assert jnp.allclose(out_r, ref_r, atol=1e-5, rtol=1e-5), "ragged kernel mismatch"

    # 4) bf16 activations (native bf16 compute on v6e/v7x, f32 upcast on v5e).
    x_bf = x.astype(jnp.bfloat16)
    out_bf = jax.block_until_ready(tanh_rt_apply(x_bf, eta, force_pallas=True))
    ref_bf = eta[0] + eta[1] * jnp.tanh((x_bf.astype(jnp.float32) - eta[2]) * eta[3])
    assert out_bf.dtype == jnp.bfloat16
    assert jnp.allclose(out_bf.astype(jnp.float32), ref_bf, atol=1e-1, rtol=1e-1), \
        "bf16 kernel mismatch"

    print("KERNEL_OK")
</pallas_src>

<mosaic_0001>
module attributes {stable_mosaic.version = 11 : i64} {
  func.func @tanh_rt_kernel(%arg0: i32, %arg1: memref<4xf32, #tpu.memory_space<smem>>, %arg2: memref<2x1024xf32, #tpu.memory_space<vmem>>, %arg3: memref<2x1024xf32, #tpu.memory_space<vmem>>) attributes {dimension_semantics = [#tpu.dimension_semantics<parallel>], iteration_bounds = array<i64: 1>, scalar_prefetch = 0 : i64, scratch_operands = 0 : i64, tpu.core_type = #tpu.core_type<tc>, window_params = [{transform_indices = @transform_0, window_bounds = array<i64: 4>}, {transform_indices = @transform_1, window_bounds = array<i64: 2, 1024>}, {transform_indices = @transform_2, window_bounds = array<i64: 2, 1024>}]} {
    %c0 = arith.constant 0 : index
    %c0_0 = arith.constant 0 : index
    %0 = vector.load %arg2[%c0, %c0_0] : memref<2x1024xf32, #tpu.memory_space<vmem>>, vector<2x1024xf32>
    %c0_1 = arith.constant 0 : index
    %1 = memref.load %arg1[%c0_1] : memref<4xf32, #tpu.memory_space<smem>>
    %c1 = arith.constant 1 : index
    %2 = memref.load %arg1[%c1] : memref<4xf32, #tpu.memory_space<smem>>
    %c2 = arith.constant 2 : index
    %3 = memref.load %arg1[%c2] : memref<4xf32, #tpu.memory_space<smem>>
    %c3 = arith.constant 3 : index
    %4 = memref.load %arg1[%c3] : memref<4xf32, #tpu.memory_space<smem>>
    %5 = vector.broadcast %3 : f32 to vector<2x1024xf32>
    %6 = arith.subf %0, %5 : vector<2x1024xf32>
    %7 = vector.broadcast %4 : f32 to vector<2x1024xf32>
    %8 = arith.mulf %6, %7 : vector<2x1024xf32>
    %9 = math.tanh %8 : vector<2x1024xf32>
    %10 = vector.broadcast %2 : f32 to vector<2x1024xf32>
    %11 = arith.mulf %10, %9 : vector<2x1024xf32>
    %12 = vector.broadcast %1 : f32 to vector<2x1024xf32>
    %13 = arith.addf %12, %11 : vector<2x1024xf32>
    %c0_2 = arith.constant 0 : index
    %c0_3 = arith.constant 0 : index
    %14 = vector.load %arg3[%c0_2, %c0_3] : memref<2x1024xf32, #tpu.memory_space<vmem>>, vector<2x1024xf32>
    tpu.vector_store %arg3[%c0_2, %c0_3], %13 {strides = array<i32>} : memref<2x1024xf32, #tpu.memory_space<vmem>>, vector<2x1024xf32>,
    return
  }
  func.func @transform_0(%arg0: i32) -> i32 {
    %c0_i32 = arith.constant 0 : i32
    %c0_i32_0 = arith.constant 0 : i32
    return %c0_i32 : i32
  }
  func.func @transform_1(%arg0: i32) -> (i32, i32) {
    %c0_i32 = arith.constant 0 : i32
    %c0_i32_0 = arith.constant 0 : i32
    return %arg0, %c0_i32 : i32, i32
  }
  func.func @transform_2(%arg0: i32) -> (i32, i32) {
    %c0_i32 = arith.constant 0 : i32
    %c0_i32_0 = arith.constant 0 : i32
    return %arg0, %c0_i32 : i32, i32
  }
}

</mosaic_0001>

<bundles_post_ra>
// kernel: tpu_custom_call.1
= control target key start
LH: loop header
LB: loop body
LE: loop exit
PB: predicated region body
PF: predicated region fallthrough
CT: control target
= control target key end

     0   :  { %7 = vsyncpa [#allocation5], 0  ;;  %s197_s0 = inlined_call_operand.hbm [shape: f32[4], index: 0, kind: input, shape index: {}]   ;;  %s198_s1 = inlined_call_operand.hbm [shape: f32[2,1024], index: 1, kind: input, shape index: {}]   ;;  %s199_s2 = inlined_call_operand.hbm [shape: f32[2,1024], index: 2, kind: output, shape index: {}]  }
   0x1   :  { %8 = vsyncpa [#allocation3], 0 }
   0x2   :  { %9 = vsyncpa [#allocation4], 0  ;;  %s83_s11 = scalar_lea.hbm %s197_s0, 16 }
   0x3   :  { %p84_p0 = scmp.ne.s32.totalorder %s197_s0, %s83_s11  ;;  %p87_p1 = scmp.lt.u32.totalorder %s83_s11, %s197_s0 }
   0x5   :  { %p89_p2 = pnand %p87_p1, %p84_p0 }
   0x7   :  { %92 = shalt.err (!%p89_p2)
}
   0x8   :  { %s143_s16 = smov [#allocation2]   ;;  %s144_s19 = smov [#allocation6]  }
   0x9   :  { %17 = dma.hbm_to_smem %s197_s0, 16, %s143_s16, [#allocation5]  }
   0xa   :  { %s24_s20 = sshll.u32 %s144_s19, 4  ;;  %s93_s23 = scalar_lea.hbm %s198_s1, 256  ;;  %s25_s20 = int_to_ptr.vmem [resolvable:$true] %s24_s20 }
   0xb   :  { %p94_p3 = scmp.ne.s32.totalorder %s198_s1, %s93_s23  ;;  %p97_p4 = scmp.lt.u32.totalorder %s93_s23, %s198_s1 }
   0xd   :  { %p99_p5 = pnand %p97_p4, %p94_p3 }
   0xf   :  { %102 = shalt.err (!%p99_p5)
}
  0x10   :  { %s103_s28 = scalar_lea.vmem %s25_s20, 256  ;;  %p108_p7 = scmp.lt.s32.totalorder %s25_s20, %s25_s20 }
  0x11   :  { %p104_p6 = scmp.ne.s32.totalorder %s25_s20, %s103_s28  ;;  %p109_p8 = scmp.lt.s32.totalorder %s103_s28, %s103_s28 }
  0x13   :  { %p110_p9 = por %p109_p8, %p108_p7 }
  0x15   :  { %p111_p10 = pnand %p110_p9, %p104_p6 }
  0x17   :  { %114 = shalt.err (!%p111_p10)
}
  0x18   :  { %27 = dma.hbm_to_vmem [thread:$0]  %s198_s1, 256, %s25_s20, [#allocation3]  }
  0x19   :  { %137 = dma.done.wait [#allocation5], 16  }
  0x1a   :  { %138 = vsyncadd [#allocation5], 4294967280 }
  0x1b   :  { %139 = dma.done.wait [#allocation3], 256  }
  0x1c   :  { %140 = vsyncadd [#allocation3], 4294967040 }
  0x1d   :  { %34 = sfence }
  0x1e   :  { %s74_s30 = sld [smem:[#allocation2 + $0x2]]  ;;  %s75_s3 = sld [smem:[#allocation2 + $0x3]]  ;;  %v35_v0 = vld [vmem:[#allocation6] sm:$0xff]  ;;  %v36_v1 = vld [vmem:[#allocation6 + $0x8] sm:$0xff] }
  0x1f   :  { %s73_s4 = sld [smem:[#allocation2 + $0x1]]  ;;  %s37_s5 = sld [smem:[#allocation2]] }
  0x20   :  { %s145_s1 = smov [#allocation7]  }
  0x21   :  { %s63_s6 = sshll.u32 %s145_s1, 4  ;;  %s64_s6 = int_to_ptr.vmem [resolvable:$true] %s63_s6 }
  0x22   :  { %s115_s7 = scalar_lea.vmem %s64_s6, 256  ;;  %p120_p12 = scmp.lt.s32.totalorder %s64_s6, %s64_s6 }
  0x23   :  { %p116_p11 = scmp.ne.s32.totalorder %s64_s6, %s115_s7  ;;  %p121_p13 = scmp.lt.s32.totalorder %s115_s7, %s115_s7 }
  0x24   :  { %v41_v2 = vstv %s74_s30  ;;  %v44_v3 = vstv %s75_s3 }
  0x25   :  { %v42_v4 = vsub.f32 %v35_v0, %v41_v2  ;;  %v43_v5 = vsub.f32 %v36_v1, %v41_v2  ;;  %v49_v8 = vstv %s73_s4  ;;  %v52_v10 = vstv %s37_s5  ;;  %p122_p0 = por %p121_p13, %p120_p12 }
  0x27   :  { %v45_v6 = vmul.f32 %v44_v3, %v42_v4  ;;  %v46_v7 = vmul.f32 %v44_v3, %v43_v5  ;;  %p123_p1 = pnand %p122_p0, %p116_p11 }
  0x29   :  { %79 = vtanh.f32 %v45_v6 }
  0x2a   :  { %81 = vtanh.f32 %v46_v7 }
  0x33   :  { %v80_v9 = vpop.eup %79 }
  0x34   :  { %v82_v11 = vpop.eup %81  ;;  %v50_v12 = vmul.f32 %v80_v9, %v49_v8 }
  0x35   :  { %v51_v13 = vmul.f32 %v82_v11, %v49_v8 }
  0x36   :  { %v53_v14 = vadd.f32 %v52_v10, %v50_v12 }
  0x37   :  { %v54_v15 = vadd.f32 %v52_v10, %v51_v13 }
  0x38   :  { %55 = vst [vmem:[#allocation7] sm:$0xff] %v53_v14 }
  0x39   :  { %56 = vst [vmem:[#allocation7 + $0x8] sm:$0xff] %v54_v15 }
  0x3a   :  { %126 = shalt.err (!%p123_p1)
}
  0x3b   :  { %s127_s10 = scalar_lea.hbm %s199_s2, 256 }
  0x3c   :  { %p128_p2 = scmp.ne.s32.totalorder %s199_s2, %s127_s10  ;;  %p131_p3 = scmp.lt.u32.totalorder %s127_s10, %s199_s2 }
  0x3e   :  { %p133_p4 = pnand %p131_p3, %p128_p2 }
  0x40   :  { %136 = shalt.err (!%p133_p4)
}
  0x41   :  { %66 = dma.vmem_to_hbm [thread:$0]  %s64_s6, 256, %s199_s2, [#allocation4]  }
  0x42   :  { %141 = dma.done.wait [#allocation4], 256  }
  0x43   :  { %142 = vsyncadd [#allocation4], 4294967040 }
  0x44   :  { %70 = vsyncpa [#allocation3], 1 }
  0x45   :  { %71 = vsyncpa [#allocation4], 1 }
  0x46   :  { %72 = vsyncpa [#allocation5], 1 }

</bundles_post_ra>
